<compile_context>
chip_gen: v6e
topology: v6e:2x2x1
jax: 0.10.0
libtpu: 0.0.40
codegen_flags: <defaults>
</compile_context>

<pallas_src>
import functools

import jax
import jax.numpy as jnp
import numpy as np
from jax.experimental import pallas as pl
from jax.experimental.pallas import tpu as pltpu


# ---------------------------------------------------------------------------
# Fused TemporalBlock kernel. One grid step = one (batch row, time tile).
#
# Packed weight layout (built in init): w_packed[o, k*Cin + c] = W_torch[o, c, k]
# xloc scratch layout: columns [0, halo) hold the causal context (previous
# tile's tail, zeros for the first tile); columns [halo, halo+TL) hold the
# current x tile.  xloc column c  <->  time  t*TL - halo + c.
# ---------------------------------------------------------------------------
def _temporal_block_kernel(x_ref, w1_ref, b1_ref, w2_ref, b2_ref, *rest,
                           K, d, TL, halo, has_down, multi_tile):
    if has_down:
        wd_ref, bd_ref, o_ref, xloc_ref, slab1_ref, slab2_ref = rest
    else:
        o_ref, xloc_ref, slab1_ref, slab2_ref = rest

    Cin = x_ref.shape[1]
    Cout = w1_ref.shape[0]
    pad = (K - 1) * d          # per-conv causal padding ( == halo // 2 )
    T1 = TL + pad              # conv1 is evaluated on the tile + conv2's halo
    t = pl.program_id(1)

    # First time tile of a batch row: the causal context is all zeros.
    if halo > 0:
        @pl.when(t == 0)
        def _init_halo():
            xloc_ref[:, :halo] = jnp.zeros((Cin, halo), jnp.float32)

    # Current x tile sits after the halo columns.
    xloc_ref[:, halo:] = x_ref[0]

    # ---- conv1 + ReLU: fold the K dilated taps into one MXU matmul ---------
    for k in range(K):                                    # K is small & static
        slab1_ref[k * Cin:(k + 1) * Cin, :] = xloc_ref[:, k * d:k * d + T1]
    h1 = jnp.dot(w1_ref[...], slab1_ref[...],
                 preferred_element_type=jnp.float32)      # (Cout, T1)
    h1 = jnp.maximum(h1 + b1_ref[...], 0.0)
    # dropout1: identity (eval mode).

    # h1 column j <-> conv1 output at time t*TL - pad + j.  PyTorch zero-pads
    # conv2's *input* on the left, so conv1 outputs at negative times must be
    # exactly 0 (not relu(b1)) on the first tile.
    if pad > 0:
        col = jax.lax.broadcasted_iota(jnp.int32, h1.shape, 1)
        h1 = jnp.where(jnp.logical_or(col >= pad, t > 0), h1, 0.0)

    # ---- conv2 (weight-normed in the wrapper) + ReLU ------------------------
    for k in range(K):
        slab2_ref[k * Cout:(k + 1) * Cout, :] = h1[:, k * d:k * d + TL]
    h2 = jnp.dot(w2_ref[...], slab2_ref[...],
                 preferred_element_type=jnp.float32)      # (Cout, TL)
    h2 = jnp.maximum(h2 + b2_ref[...], 0.0)
    # dropout2: identity (eval mode).

    # ---- residual branch + final ReLU ---------------------------------------
    x_res = xloc_ref[:, halo:]                            # (Cin, TL)
    if has_down:                                          # 1x1 downsample conv
        res = jnp.dot(wd_ref[...], x_res,
                      preferred_element_type=jnp.float32) + bd_ref[...]
    else:                                                 # identity: no matmul, no DMA
        res = x_res
    o_ref[0] = jnp.maximum(h2 + res, 0.0).astype(o_ref.dtype)

    # ---- carry the last `halo` x columns to the next time tile --------------
    if halo > 0 and multi_tile:
        xloc_ref[:, :halo] = xloc_ref[:, TL:TL + halo]


def _choose_time_tile(L, halo, target):
    """Largest lane-friendly time tile: multiple of 128 that divides L, >= halo."""
    if L <= target:
        return L
    start = target - (target % 128)
    for tl in range(start, 127, -128):
        if L % tl == 0 and tl >= halo:
            return tl
    return L    # fall back to a single tile along time


def temporal_block(x_bct, p, dilation, tl_target=512):
    """Fused TemporalBlock (conv1+relu+conv2+relu+residual+relu), NCW layout."""
    B, Cin, L = x_bct.shape
    K = int(p["kernel_size"])
    Cout = p["w1"].shape[0]
    d = int(dilation)
    pad = (K - 1) * d
    halo = 2 * pad
    TL = _choose_time_tile(L, halo, tl_target)
    nT = L // TL
    assert L % TL == 0 and (nT == 1 or TL >= halo)
    has_down = "wd" in p

    kern = functools.partial(_temporal_block_kernel, K=K, d=d, TL=TL,
                             halo=halo, has_down=has_down, multi_tile=nT > 1)

    in_specs = [
        pl.BlockSpec((1, Cin, TL), lambda b, t: (b, 0, t)),      # x time tile
        pl.BlockSpec((Cout, K * Cin), lambda b, t: (0, 0)),      # conv1 weight
        pl.BlockSpec((Cout, 1), lambda b, t: (0, 0)),            # conv1 bias
        pl.BlockSpec((Cout, K * Cout), lambda b, t: (0, 0)),     # conv2 weight
        pl.BlockSpec((Cout, 1), lambda b, t: (0, 0)),            # conv2 bias
    ]
    args = [x_bct, p["w1"], p["b1"], p["w2"], p["b2"]]
    if has_down:
        in_specs += [pl.BlockSpec((Cout, Cin), lambda b, t: (0, 0)),
                     pl.BlockSpec((Cout, 1), lambda b, t: (0, 0))]
        args += [p["wd"], p["bd"]]

    return pl.pallas_call(
        kern,
        out_shape=jax.ShapeDtypeStruct((B, Cout, L), jnp.float32),
        grid_spec=pltpu.PrefetchScalarGridSpec(
            num_scalar_prefetch=0,
            grid=(B, nT),
            in_specs=in_specs,
            out_specs=pl.BlockSpec((1, Cout, TL), lambda b, t: (b, 0, t)),
            scratch_shapes=[
                pltpu.VMEM((Cin, TL + halo), jnp.float32),      # x tile + halo
                pltpu.VMEM((K * Cin, TL + pad), jnp.float32),   # conv1 K-tap slab
                pltpu.VMEM((K * Cout, TL), jnp.float32),        # conv2 K-tap slab
            ],
        ),
        compiler_params=pltpu.CompilerParams(
            # Batch axis is megacore-parallel; the time axis carries the causal
            # halo in VMEM scratch, so it must run sequentially ("arbitrary").
            dimension_semantics=("parallel", "arbitrary"),
            vmem_limit_bytes=48 * 1024 * 1024,
        ),
    )(*args)


def temporal_conv_net(x_bct, params, tl_target=512):
    """TemporalConvNet forward (non_local=False). NCW (B, C, T) in and out."""
    # TODO(synk): non_local=True branch (theta/phi/beta 1x1 convs + softmax bmm)
    # is not implemented (module default is non_local=False).
    x = x_bct.astype(jnp.float32)
    for i, p in enumerate(params):
        x = temporal_block(x, p, dilation=2 ** i, tl_target=tl_target)
    return x


# ---------------------------------------------------------------------------
# Parameter initialization (deterministic, mirrors the PyTorch module shapes)
# ---------------------------------------------------------------------------
def init_tcn_params(key, num_inputs, num_channels, kernel_size):
    params = []
    for i, out_ch in enumerate(num_channels):
        in_ch = num_inputs if i == 0 else num_channels[i - 1]
        key, k1, k2, k3, k4, k5, k6, k7 = jax.random.split(key, 8)

        # conv1: weight.normal_(0, 0.01), PyTorch layout (Cout, Cin, K)
        w1_oik = 0.01 * jax.random.normal(k1, (out_ch, in_ch, kernel_size), jnp.float32)
        b1 = 0.01 * jax.random.normal(k2, (out_ch,), jnp.float32)

        # conv2 wrapped in weight_norm (dim=0): w = g * v / ||v||_{(in,k)}
        v2 = 0.01 * jax.random.normal(k3, (out_ch, out_ch, kernel_size), jnp.float32)
        g2 = 1.0 + 0.1 * jax.random.normal(k4, (out_ch,), jnp.float32)
        nrm = jnp.sqrt(jnp.sum(v2 * v2, axis=(1, 2), keepdims=True))
        w2_oik = g2.reshape(-1, 1, 1) * v2 / nrm
        b2 = 0.01 * jax.random.normal(k5, (out_ch,), jnp.float32)

        p = dict(
            kernel_size=kernel_size,
            # packed for the fused kernel: [o, k*Cin + c] = W_torch[o, c, k]
            w1=jnp.transpose(w1_oik, (0, 2, 1)).reshape(out_ch, kernel_size * in_ch),
            b1=b1.reshape(out_ch, 1),
            w2=jnp.transpose(w2_oik, (0, 2, 1)).reshape(out_ch, kernel_size * out_ch),
            b2=b2.reshape(out_ch, 1),
        )
        # downsample 1x1 conv only when channel counts differ; identity residual
        # otherwise (no matmul, no weight DMA).
        if in_ch != out_ch:
            p["wd"] = 0.01 * jax.random.normal(k6, (out_ch, in_ch), jnp.float32)
            p["bd"] = 0.01 * jax.random.normal(k7, (out_ch,), jnp.float32).reshape(out_ch, 1)
        params.append(p)
    return params


# ---------------------------------------------------------------------------
# Pure-JAX reference (same math, no Pallas) for the correctness check
# ---------------------------------------------------------------------------
def _ref_temporal_block(x, p, d):
    K = int(p["kernel_size"])
    Cout = p["w1"].shape[0]

    def conv(xin, w_packed, b):
        _, Ci, L = xin.shape
        w = w_packed.reshape(Cout, K, Ci)
        pad = (K - 1) * d
        xp = jnp.pad(xin, ((0, 0), (0, 0), (pad, 0)))
        out = b.reshape(1, Cout, 1)
        for k in range(K):
            out = out + jnp.einsum("oc,bct->bot", w[:, k, :],
                                   xp[:, :, k * d:k * d + L])
        return out

    h = jnp.maximum(conv(x, p["w1"], p["b1"]), 0.0)
    h = jnp.maximum(conv(h, p["w2"], p["b2"]), 0.0)
    if "wd" in p:
        res = jnp.einsum("oc,bct->bot", p["wd"], x) + p["bd"].reshape(1, Cout, 1)
    else:
        res = x
    return jnp.maximum(h + res, 0.0)


def _ref_forward(x_bct, params):
    x = x_bct.astype(jnp.float32)
    for i, p in enumerate(params):
        x = _ref_temporal_block(x, p, 2 ** i)
    return x


if __name__ == "__main__":
    key = jax.random.PRNGKey(0)
    kp, kx1, kx2 = jax.random.split(key, 3)

    # TemporalConvNet(num_inputs=4, num_channels=[8, 8], kernel_size=2)
    num_inputs, num_channels, kernel_size = 4, [8, 8], 2
    params = init_tcn_params(kp, num_inputs, num_channels, kernel_size)

    # Case 1: small shapes (single time tile), PyTorch NCW layout (B, C, T).
    B, L = 2, 16
    x = jax.random.normal(kx1, (B, num_inputs, L), jnp.float32)
    out = jax.block_until_ready(temporal_conv_net(x, params))
    ref = jax.block_until_ready(_ref_forward(x, params))
    np.testing.assert_allclose(np.asarray(out), np.asarray(ref), rtol=1e-5, atol=1e-5)
    assert out.shape == (B, num_channels[-1], L)

    # Case 2: longer sequence with multiple 128-wide time tiles, exercising the
    # cross-tile causal-halo carry (dilations 1 and 2).
    L2 = 256
    x2 = jax.random.normal(kx2, (B, num_inputs, L2), jnp.float32)
    out2 = jax.block_until_ready(temporal_conv_net(x2, params, tl_target=128))
    ref2 = jax.block_until_ready(_ref_forward(x2, params))
    np.testing.assert_allclose(np.asarray(out2), np.asarray(ref2),
                               rtol=1e-5, atol=1e-5)

    print("KERNEL_OK")
</pallas_src>

<mosaic_0001>
module attributes {stable_mosaic.version = 11 : i64} {
  func.func @_temporal_block_kernel(%arg0: i32, %arg1: i32, %arg2: memref<1x4x16xf32, #tpu.memory_space<vmem>>, %arg3: memref<8x8xf32, #tpu.memory_space<vmem>>, %arg4: memref<8x1xf32, #tpu.memory_space<vmem>>, %arg5: memref<8x16xf32, #tpu.memory_space<vmem>>, %arg6: memref<8x1xf32, #tpu.memory_space<vmem>>, %arg7: memref<8x4xf32, #tpu.memory_space<vmem>>, %arg8: memref<8x1xf32, #tpu.memory_space<vmem>>, %arg9: memref<1x8x16xf32, #tpu.memory_space<vmem>>, %arg10: memref<4x18xf32, #tpu.memory_space<vmem>>, %arg11: memref<8x17xf32, #tpu.memory_space<vmem>>, %arg12: memref<16x16xf32, #tpu.memory_space<vmem>>) attributes {dimension_semantics = [#tpu.dimension_semantics<parallel>, #tpu.dimension_semantics<arbitrary>], iteration_bounds = array<i64: 2, 1>, scalar_prefetch = 0 : i64, scratch_operands = 3 : i64, tpu.core_type = #tpu.core_type<tc>, window_params = [{transform_indices = @transform_0, window_bounds = array<i64: 1, 4, 16>}, {pipeline_mode = #tpu.pipeline_mode<synchronous>, transform_indices = @transform_1, window_bounds = array<i64: 8, 8>}, {pipeline_mode = #tpu.pipeline_mode<synchronous>, transform_indices = @transform_2, window_bounds = array<i64: 8, 1>}, {pipeline_mode = #tpu.pipeline_mode<synchronous>, transform_indices = @transform_3, window_bounds = array<i64: 8, 16>}, {pipeline_mode = #tpu.pipeline_mode<synchronous>, transform_indices = @transform_4, window_bounds = array<i64: 8, 1>}, {pipeline_mode = #tpu.pipeline_mode<synchronous>, transform_indices = @transform_5, window_bounds = array<i64: 8, 4>}, {pipeline_mode = #tpu.pipeline_mode<synchronous>, transform_indices = @transform_6, window_bounds = array<i64: 8, 1>}, {transform_indices = @transform_7, window_bounds = array<i64: 1, 8, 16>}]} {
    %c0_i32 = arith.constant 0 : i32
    %0 = arith.cmpi eq, %arg1, %c0_i32 : i32
    %1 = arith.extui %0 : i1 to i32
    %c0_i32_0 = arith.constant 0 : i32
    %2 = arith.cmpi ne, %1, %c0_i32_0 : i32
    scf.if %2 {
      %cst_41 = arith.constant 0.000000e+00 : f32
      %50 = vector.broadcast %cst_41 : f32 to vector<4x2xf32>
      %c0_42 = arith.constant 0 : index
      %c0_43 = arith.constant 0 : index
      %51 = vector.load %arg10[%c0_42, %c0_43] : memref<4x18xf32, #tpu.memory_space<vmem>>, vector<4x2xf32>
      tpu.vector_store %arg10[%c0_42, %c0_43], %50 {strides = array<i32>} : memref<4x18xf32, #tpu.memory_space<vmem>>, vector<4x2xf32>,
    } else {
    }
    %c0 = arith.constant 0 : index
    %c0_1 = arith.constant 0 : index
    %c0_2 = arith.constant 0 : index
    %3 = vector.load %arg2[%c0, %c0_1, %c0_2] : memref<1x4x16xf32, #tpu.memory_space<vmem>>, vector<1x4x16xf32>
    %4 = vector.shape_cast %3 : vector<1x4x16xf32> to vector<4x16xf32>
    %c0_3 = arith.constant 0 : index
    %c2 = arith.constant 2 : index
    %5 = vector.load %arg10[%c0_3, %c2] : memref<4x18xf32, #tpu.memory_space<vmem>>, vector<4x16xf32>
    tpu.vector_store %arg10[%c0_3, %c2], %4 {strides = array<i32>} : memref<4x18xf32, #tpu.memory_space<vmem>>, vector<4x16xf32>,
    %c0_4 = arith.constant 0 : index
    %c0_5 = arith.constant 0 : index
    %6 = vector.load %arg10[%c0_4, %c0_5] : memref<4x18xf32, #tpu.memory_space<vmem>>, vector<4x17xf32>
    %c0_6 = arith.constant 0 : index
    %c0_7 = arith.constant 0 : index
    %7 = vector.load %arg11[%c0_6, %c0_7] : memref<8x17xf32, #tpu.memory_space<vmem>>, vector<4x17xf32>
    tpu.vector_store %arg11[%c0_6, %c0_7], %6 {strides = array<i32>} : memref<8x17xf32, #tpu.memory_space<vmem>>, vector<4x17xf32>,
    %c0_8 = arith.constant 0 : index
    %c1 = arith.constant 1 : index
    %8 = vector.load %arg10[%c0_8, %c1] : memref<4x18xf32, #tpu.memory_space<vmem>>, vector<4x17xf32>
    %c4 = arith.constant 4 : index
    %c0_9 = arith.constant 0 : index
    %9 = vector.load %arg11[%c4, %c0_9] : memref<8x17xf32, #tpu.memory_space<vmem>>, vector<4x17xf32>
    tpu.vector_store %arg11[%c4, %c0_9], %8 {strides = array<i32>} : memref<8x17xf32, #tpu.memory_space<vmem>>, vector<4x17xf32>,
    %c0_10 = arith.constant 0 : index
    %c0_11 = arith.constant 0 : index
    %10 = vector.load %arg3[%c0_10, %c0_11] : memref<8x8xf32, #tpu.memory_space<vmem>>, vector<8x8xf32>
    %c0_12 = arith.constant 0 : index
    %c0_13 = arith.constant 0 : index
    %11 = vector.load %arg11[%c0_12, %c0_13] : memref<8x17xf32, #tpu.memory_space<vmem>>, vector<8x17xf32>
    %cst = arith.constant dense<0.000000e+00> : vector<8x17xf32>
    %12 = tpu.matmul %10, %11, %cst {dimension_numbers = #tpu.dot_dimension_numbers<[1], [0], [0], [1], [0, 0, 1, 1], [], []>} : vector<8x8xf32>, vector<8x17xf32>, vector<8x17xf32> -> vector<8x17xf32>
    %c0_14 = arith.constant 0 : index
    %c0_15 = arith.constant 0 : index
    %13 = vector.load %arg4[%c0_14, %c0_15] : memref<8x1xf32, #tpu.memory_space<vmem>>, vector<8x1xf32>
    %14 = vector.broadcast %13 : vector<8x1xf32> to vector<8x17xf32>
    %15 = arith.addf %12, %14 : vector<8x17xf32>
    %cst_16 = arith.constant 0.000000e+00 : f32
    %16 = vector.broadcast %cst_16 : f32 to vector<8x17xf32>
    %17 = arith.maximumf %15, %16 : vector<8x17xf32>
    %18 = tpu.iota {dimensions = array<i32: 1>} : vector<8x17xi32>
    %c1_i32 = arith.constant 1 : i32
    %19 = vector.broadcast %c1_i32 : i32 to vector<8x17xi32>
    %20 = arith.cmpi sge, %18, %19 : vector<8x17xi32>
    %c0_i32_17 = arith.constant 0 : i32
    %21 = arith.cmpi sgt, %arg1, %c0_i32_17 : i32
    %22 = vector.broadcast %21 : i1 to vector<8x17xi1>
    %23 = arith.ori %20, %22 : vector<8x17xi1>
    %cst_18 = arith.constant 0.000000e+00 : f32
    %24 = vector.broadcast %cst_18 : f32 to vector<8x17xf32>
    %25 = arith.select %23, %17, %24 : vector<8x17xi1>, vector<8x17xf32>
    %26 = vector.extract_strided_slice %25 {offsets = [0, 0], sizes = [8, 16], strides = [1, 1]} : vector<8x17xf32> to vector<8x16xf32>
    %c0_19 = arith.constant 0 : index
    %c0_20 = arith.constant 0 : index
    %27 = vector.load %arg12[%c0_19, %c0_20] : memref<16x16xf32, #tpu.memory_space<vmem>>, vector<8x16xf32>
    tpu.vector_store %arg12[%c0_19, %c0_20], %26 {strides = array<i32>} : memref<16x16xf32, #tpu.memory_space<vmem>>, vector<8x16xf32>,
    %28 = vector.extract_strided_slice %25 {offsets = [0, 1], sizes = [8, 16], strides = [1, 1]} : vector<8x17xf32> to vector<8x16xf32>
    %c8 = arith.constant 8 : index
    %c0_21 = arith.constant 0 : index
    %29 = vector.load %arg12[%c8, %c0_21] : memref<16x16xf32, #tpu.memory_space<vmem>>, vector<8x16xf32>
    tpu.vector_store %arg12[%c8, %c0_21], %28 {strides = array<i32>} : memref<16x16xf32, #tpu.memory_space<vmem>>, vector<8x16xf32>,
    %c0_22 = arith.constant 0 : index
    %c0_23 = arith.constant 0 : index
    %30 = vector.load %arg5[%c0_22, %c0_23] : memref<8x16xf32, #tpu.memory_space<vmem>>, vector<8x16xf32>
    %c0_24 = arith.constant 0 : index
    %c0_25 = arith.constant 0 : index
    %31 = vector.load %arg12[%c0_24, %c0_25] : memref<16x16xf32, #tpu.memory_space<vmem>>, vector<16x16xf32>
    %cst_26 = arith.constant dense<0.000000e+00> : vector<8x16xf32>
    %32 = tpu.matmul %30, %31, %cst_26 {dimension_numbers = #tpu.dot_dimension_numbers<[1], [0], [0], [1], [0, 0, 1, 1], [], []>} : vector<8x16xf32>, vector<16x16xf32>, vector<8x16xf32> -> vector<8x16xf32>
    %c0_27 = arith.constant 0 : index
    %c0_28 = arith.constant 0 : index
    %33 = vector.load %arg6[%c0_27, %c0_28] : memref<8x1xf32, #tpu.memory_space<vmem>>, vector<8x1xf32>
    %34 = vector.broadcast %33 : vector<8x1xf32> to vector<8x16xf32>
    %35 = arith.addf %32, %34 : vector<8x16xf32>
    %cst_29 = arith.constant 0.000000e+00 : f32
    %36 = vector.broadcast %cst_29 : f32 to vector<8x16xf32>
    %37 = arith.maximumf %35, %36 : vector<8x16xf32>
    %c0_30 = arith.constant 0 : index
    %c2_31 = arith.constant 2 : index
    %38 = vector.load %arg10[%c0_30, %c2_31] : memref<4x18xf32, #tpu.memory_space<vmem>>, vector<4x16xf32>
    %c0_32 = arith.constant 0 : index
    %c0_33 = arith.constant 0 : index
    %39 = vector.load %arg7[%c0_32, %c0_33] : memref<8x4xf32, #tpu.memory_space<vmem>>, vector<8x4xf32>
    %cst_34 = arith.constant dense<0.000000e+00> : vector<8x16xf32>
    %40 = tpu.matmul %39, %38, %cst_34 {dimension_numbers = #tpu.dot_dimension_numbers<[1], [0], [0], [1], [0, 0, 1, 1], [], []>} : vector<8x4xf32>, vector<4x16xf32>, vector<8x16xf32> -> vector<8x16xf32>
    %c0_35 = arith.constant 0 : index
    %c0_36 = arith.constant 0 : index
    %41 = vector.load %arg8[%c0_35, %c0_36] : memref<8x1xf32, #tpu.memory_space<vmem>>, vector<8x1xf32>
    %42 = vector.broadcast %41 : vector<8x1xf32> to vector<8x16xf32>
    %43 = arith.addf %40, %42 : vector<8x16xf32>
    %44 = arith.addf %37, %43 : vector<8x16xf32>
    %cst_37 = arith.constant 0.000000e+00 : f32
    %45 = vector.broadcast %cst_37 : f32 to vector<8x16xf32>
    %46 = arith.maximumf %44, %45 : vector<8x16xf32>
    %c0_38 = arith.constant 0 : index
    %c0_39 = arith.constant 0 : index
    %c0_40 = arith.constant 0 : index
    %47 = vector.load %arg9[%c0_38, %c0_39, %c0_40] : memref<1x8x16xf32, #tpu.memory_space<vmem>>, vector<1x8x16xf32>
    %48 = vector.shape_cast %47 : vector<1x8x16xf32> to vector<8x16xf32>
    %49 = vector.shape_cast %46 : vector<8x16xf32> to vector<1x8x16xf32>
    tpu.vector_store %arg9[%c0_38, %c0_39, %c0_40], %49 {strides = array<i32>} : memref<1x8x16xf32, #tpu.memory_space<vmem>>, vector<1x8x16xf32>,
    return
  }
  func.func @transform_0(%arg0: i32, %arg1: i32) -> (i32, i32, i32) {
    %c0_i32 = arith.constant 0 : i32
    %c0_i32_0 = arith.constant 0 : i32
    return %arg0, %c0_i32, %arg1 : i32, i32, i32
  }
  func.func @transform_1(%arg0: i32, %arg1: i32) -> (i32, i32) {
    %c0_i32 = arith.constant 0 : i32
    %c0_i32_0 = arith.constant 0 : i32
    %c0_i32_1 = arith.constant 0 : i32
    return %c0_i32, %c0_i32_0 : i32, i32
  }
  func.func @transform_2(%arg0: i32, %arg1: i32) -> (i32, i32) {
    %c0_i32 = arith.constant 0 : i32
    %c0_i32_0 = arith.constant 0 : i32
    %c0_i32_1 = arith.constant 0 : i32
    return %c0_i32, %c0_i32_0 : i32, i32
  }
  func.func @transform_3(%arg0: i32, %arg1: i32) -> (i32, i32) {
    %c0_i32 = arith.constant 0 : i32
    %c0_i32_0 = arith.constant 0 : i32
    %c0_i32_1 = arith.constant 0 : i32
    return %c0_i32, %c0_i32_0 : i32, i32
  }
  func.func @transform_4(%arg0: i32, %arg1: i32) -> (i32, i32) {
    %c0_i32 = arith.constant 0 : i32
    %c0_i32_0 = arith.constant 0 : i32
    %c0_i32_1 = arith.constant 0 : i32
    return %c0_i32, %c0_i32_0 : i32, i32
  }
  func.func @transform_5(%arg0: i32, %arg1: i32) -> (i32, i32) {
    %c0_i32 = arith.constant 0 : i32
    %c0_i32_0 = arith.constant 0 : i32
    %c0_i32_1 = arith.constant 0 : i32
    return %c0_i32, %c0_i32_0 : i32, i32
  }
  func.func @transform_6(%arg0: i32, %arg1: i32) -> (i32, i32) {
    %c0_i32 = arith.constant 0 : i32
    %c0_i32_0 = arith.constant 0 : i32
    %c0_i32_1 = arith.constant 0 : i32
    return %c0_i32, %c0_i32_0 : i32, i32
  }
  func.func @transform_7(%arg0: i32, %arg1: i32) -> (i32, i32, i32) {
    %c0_i32 = arith.constant 0 : i32
    %c0_i32_0 = arith.constant 0 : i32
    return %arg0, %c0_i32, %arg1 : i32, i32, i32
  }
}

</mosaic_0001>

<bundles_post_ra>
// kernel: tpu_custom_call.1
= control target key start
LH: loop header
LB: loop body
LE: loop exit
PB: predicated region body
PF: predicated region fallthrough
CT: control target
= control target key end

     0   :  { %12 = vsyncpa [#allocation6], 0  ;;  %s1041_s0 = inlined_call_operand.vmem [shape: f32[2,4,16], index: 0, kind: input, shape index: {}]   ;;  %s1042_s1 = inlined_call_operand.vmem [shape: f32[8,8], index: 1, kind: input, shape index: {}]   ;;  %s1043_s2 = inlined_call_operand.vmem [shape: f32[8,1], index: 2, kind: input, shape index: {}]   ;;  %s1044_s3 = inlined_call_operand.vmem [shape: f32[8,16], index: 3, kind: input, shape index: {}]   ;;  %s1045_s4 = inlined_call_operand.vmem [shape: f32[8,1], index: 4, kind: input, shape index: {}]   ;;  %s1046_s5 = inlined_call_operand.vmem [shape: f32[8,4], index: 5, kind: input, shape index: {}]   ;;  %s1047_s6 = inlined_call_operand.vmem [shape: f32[8,1], index: 6, kind: input, shape index: {}]   ;;  %s1048_s7 = inlined_call_operand.hbm [shape: f32[2,8,16], index: 7, kind: output, shape index: {}]  }
   0x1   :  { %14 = vsyncpa [#allocation6 + $0x1], 0  ;;  %s907_s24 = smov 0   ;;  %s909_s25 = smov 0  }
   0x2   :  { %s911_s26 = smov 0   ;;  %s913_s27 = smov 0  }
   0x3   :  { %s915_s28 = smov 0   ;;  %s917_s29 = smov 0  }
   0x4 LB: > { %s680_s30 = sadd.s32 4294967295, %s858_s29   ;;  %s681_s8 = sadd.s32 4294967294, %s858_s29   ;;  %s858_s29 = sphi %s917_s29, %s20_s29   ;;  %s854_s28 = sphi %s915_s28, %s1055_s28   ;;  %s850_s27 = sphi %s913_s27, %s1054_s27   ;;  %s846_s26 = sphi %s911_s26, %s1053_s26   ;;  %s842_s25 = sphi %s909_s25, %s1052_s25   ;;  %s838_s24 = sphi %s907_s24, %s1051_s24  }
   0x5   : > { %s32_s9 = sadd.s32 1, %s854_s28  ;;  %s195_s10 = sadd.s32 1, %s846_s26 }
   0x6   : > { %p34_p0 = scmp.ge.s32.totalorder %s32_s9, 2  ;;  %p205_p1 = scmp.ne.s32.totalorder %s846_s26, %s842_s25 }
   0x7   : > { %p206_p2 = scmp.eq.s32.totalorder %s680_s30, 1  ;;  %p211_p3 = scmp.ne.s32.totalorder %s842_s25, %s838_s24 }
   0x8   : > { %s1057_s9 = smov (%p34_p0, %s32_s9), 0  ;;  %p212_p5 = scmp.eq.s32.totalorder %s681_s8, 1 }
   0x9   : > { %p947_p4 = por %p206_p2, %p205_p1  ;;  %s190_s12 = ssub.s32 %s854_s28, %s1057_s9 }
   0xa   : > { %p684_p6 = scmp.ge.s32.totalorder %s858_s29, 1  ;;  %p193_p7 = scmp.eq.s32.totalorder %s190_s12, 0 }
   0xb   : > { %p954_p8 = por %p212_p5, %p211_p3  ;;  %p258_p9 = scmp.lt.s32.totalorder %s858_s29, 3 }
   0xc   : > { %s960_s14 = scalar_select %p193_p7, %s846_s26, %s195_s10  }
   0xd   : > { %p259_p10 = pnand %p684_p6, %p258_p9 }
   0xe   : > { %p292_p11 = scmp.lt.s32.totalorder (!%p259_p10), %s850_s27, 1  ;;  %s861_s20 = smov (!%p259_p10), 2  }
   0xf   : > { %262 = sbr.rel (%p259_p10) target bundleno = 810 (0x32a), region = 48  ;;  %s864_s23 = smov (!%p259_p10), 127  }
  0x10   : > { %s865_s30 = smov (!%p259_p10), 126   ;;  %s289_s22 = sand.u32 (!%p259_p10), 1, %s842_s25  }
  0x11   : > { %s595_s17 = scalar_lea.sflag (!%p259_p10), [#allocation6], %s289_s22 }
  0x14   : > { %vm303_vm0 = vcmask 11264   ;;  %v860_v0 = vmov 0.0   ;;  %s293_s15 = scalar_select %p292_p11, %s850_s27, 1  ;;  %vm310_vm1 = vcmask 142352   ;;  %vm862_vm2 = vmmov 0   ;;  %v323_v3 = vld [vmem:[%s1043_s2] sm:$0xff] }
  0x15   : > { %304 = vst.msk [vmem:[#allocation2] sm:$0xf] %vm303_vm0, %v860_v0  ;;  %702 = vmatprep.subr.mxu0 %v860_v0  ;;  %707 = vmatprep.subr.mxu1 %v860_v0  ;;  %vm313_vm3 = vcmask 134144   ;;  %v863_v4 = vmov 0   ;;  %v321_v9 = vld [vmem:[%s1042_s1] sm:$0xff]  ;;  %vm329_vm4 = vcmask 64512   ;;  %v404_v12 = vlaneseq }
  0x16   : > { %s686_s16 = sshll.u32 %s293_s15, 2  ;;  %704 = vmatprep.mubr.msk.f32.mxu0 %vm862_vm2, %v860_v0  ;;  %711 = vmatprep.mubr.msk.f32.mxu1 %vm862_vm2, %v860_v0  ;;  %vm518_vm5 = vcmask 1043456   ;;  %vm413_vm7 = vcmask 130048   ;;  %v504_v19 = vld [vmem:[%s1046_s5] sm:$0xff]  ;;  %vm514_vm8 = vcmask 31744  }
  0x17   : > { %s298_s19 = scalar_lea.vmem %s1041_s0, %s686_s16  ;;  %780 = vset.pattern.permute.xlu1 %v863_v4  ;;  %781 = vset.pattern.permute.xlu0 %v863_v4  ;;  %v405_v14 = vand.u32 127, %v404_v12  ;;  %v505_v21 = vld [vmem:[%s1047_s6] sm:$0xff] }
  0x18   : > { %v305_v1 = vld [vmem:[%s298_s19] sm:$0xf]  ;;  %326 = vperm.xlu1 %780, %v323_v3   ;;  %s866_s19 = smov [#allocation5]  }
  0x19   : > { %307 = vrot.lane.b32.xlu0 %v305_v1, %s861_s20  ;;  %vm406_vm6 = vcmp.ge.s32.totalorder %v405_v14, 1  ;;  %v423_v22 = vld [vmem:[%s1045_s4] sm:$0xff]  ;;  %s786_s20 = sshll.u32 %s866_s19, 4  ;;  %s787_s20 = int_to_ptr.vmem [resolvable:$false] %s786_s20 }
  0x1a   : > { %v420_v25 = vld [vmem:[%s1044_s3] sm:$0xff] }
  0x8b   : > { %v308_v2 = vpop.permute.xlu0 %307 }
  0x8c   : > { %311 = vst.msk [vmem:[#allocation2] sm:$0xf] %vm310_vm1, %v308_v2 }
  0x93   : > { %v315_v5 = vld [vmem:[#allocation2] sm:$0xf]  ;;  %v327_v13 = vpop.permute.xlu1 %326 }
  0x94   : > { %v312_v6 = vld [vmem:[#allocation2] sm:$0xf]  ;;  %317 = vrot.lane.b32.xlu0 %v315_v5, %s864_s23 }
  0x95   : > { %314 = vst.msk [vmem:[#allocation3] sm:$0xf] %vm313_vm3, %v312_v6  ;;  %v503_v7 = vld [vmem:[#allocation2] sm:$0xf] }
  0x98   : > { %512 = vrot.lane.b32.xlu0 %v503_v7, %s865_s30  ;;  %s692_s30 = sshll.u32 %s850_s27, 7  ;;  %s788_s27 = scalar_lea.vmem %s787_s20, 256 }
  0x99   : > { %s607_s16 = scalar_lea.hbm %s1048_s7, %s692_s30 }
  0x9c   : > { %508 = vperm.xlu0 %781, %v505_v21  }
 0x106   : > { %v318_v8 = vpop.permute.xlu0 %317 }
 0x107   : > { %320 = vst.msk [vmem:[#allocation3 + $0x4] sm:$0xf] %vm313_vm3, %v318_v8 }
 0x10a   : > { %v513_v11 = vpop.permute.xlu0 %512 }
 0x10e   : > { %v322_v10 = vld [vmem:[#allocation3] sm:$0xff] }
 0x10f   : > { %703 = vmatpush3.msra.mxu0 %v322_v10 }
 0x110   : > { %705 = vmatmul.mubr.msk.f32.vlgmr.msra.gmra.mxu0 %vm329_vm4, %v321_v9  ;;  %714 = vmatprep.subr.mxu0 %v860_v0 }
 0x111   : > { %715 = vmatpush3.msk.msra.mxu0 %vm518_vm5, %v513_v11  ;;  %716 = vmatprep.mubr.msk.f32.mxu0 %vm862_vm2, %v860_v0 }
 0x114   : > { %717 = vmatmul.mubr.msk.f32.vlgmr.msra.gmra.mxu0 %vm514_vm8, %v504_v19 }
 0x117   : > { %v509_v29 = vpop.permute.xlu0 %508 }
 0x1d0   : > { %v399_v15 = vpop.f32.mrf.mxu0 }
 0x1d1   : > { %v400_v16 = vadd.f32 %v399_v15, %v327_v13 }
 0x1d2   : > { %v706_v17 = vpop.f32.mrf.mxu0 }
 0x1d3   : > { %v403_v18 = vmax.f32 %v400_v16, 0.0 }
 0x1d4   : > { %v587_v27 = vpop.f32.mrf.mxu0 }
 0x1d5   : > { %v412_v20 = vsel %vm406_vm6, %v403_v18, 0.0  ;;  %v588_v33 = vadd.f32 %v587_v27, %v509_v29 }
 0x1d6   : > { %416 = vrot.lane.b32.xlu1 %v412_v20, %s864_s23  ;;  %414 = vst.msk [vmem:[#allocation4] sm:$0xff] %vm413_vm7, %v412_v20  ;;  %v718_v28 = vpop.f32.mrf.mxu0  ;;  %s685_s23 = sshll.u32 %s289_s22, 3 }
 0x1d7   : > { %s291_s8 = scalar_lea.vmem [#allocation5], %s685_s23 }
 0x1d8   : > { %s609_s10 = sshll.u32 %s291_s8, 4  ;;  %s610_s10 = int_to_ptr.vmem [resolvable:$true] %s609_s10 }
 0x1d9   : > { %s782_s18 = scalar_lea.vmem %s610_s10, 128  ;;  %p789_p1 = scmp.lt.s32.totalorder %s610_s10, %s787_s20 }
 0x1da   : > { %426 = vperm.xlu1 %780, %v423_v22   ;;  %p783_p12 = scmp.ne.s32.totalorder %s610_s10, %s782_s18  ;;  %p790_p2 = scmp.lt.s32.totalorder %s788_s27, %s782_s18 }
 0x1dc   : > { %p784_p13 = pnand %p783_p12, %p947_p4  ;;  %p791_p3 = por %p790_p2, %p789_p1 }
 0x1dd   : > { %v421_v26 = vld [vmem:[#allocation4] sm:$0xff] }
 0x1de   : > { %p785_p0 = pneg %p784_p13 }
 0x1e0   : > { %p792_p5 = pnand %p791_p3, %p785_p0 }
 0x248   : > { %v417_v23 = vpop.permute.xlu1 %416 }
 0x249   : > { %419 = vst.msk [vmem:[#allocation4 + $0x8] sm:$0xff] %vm413_vm7, %v417_v23 }
 0x250   : > { %v422_v24 = vld [vmem:[#allocation4 + $0x8] sm:$0xff] }
 0x251   : > { %708 = vmatpush3.msra.mxu1 %v422_v24 }
 0x252   : > { %709 = vmatprep.subr.mxu1 %v860_v0 }
 0x253   : > { %710 = vmatpush3.msra.mxu1 %v421_v26 }
 0x254   : > { %712 = vmatmul.mubr.msk.f32.vlgmr.msra.gmra.mxu1 %vm413_vm7, %v420_v25 }
 0x255   : > { %v427_v30 = vpop.permute.xlu1 %426 }
 0x314   : > { %v498_v31 = vpop.f32.mrf.mxu1 }
 0x315   : > { %v499_v32 = vadd.f32 %v498_v31, %v427_v30 }
 0x316   : > { %v713_v34 = vpop.f32.mrf.mxu1 }
 0x317   : > { %v502_v35 = vmax.f32 %v499_v32, 0.0 }
 0x319   : > { %v591_v36 = vadd.f32 %v588_v33, %v502_v35 }
 0x31b   : > { %v592_v37 = vmax.f32 %v591_v36, 0.0 }
 0x31d   : > { %593 = vst.msk [vmem:[%s291_s8] sm:$0xff] %vm413_vm7, %v592_v37 }
 0x31e   : > { %795 = shalt.err (!%p792_p5)
}
 0x31f   : > { %s796_s21 = scalar_lea.hbm %s607_s16, 128  ;;  %s800_s30 = scalar_lea.hbm %s1048_s7, 256 }
 0x320   : > { %p797_p6 = scmp.ne.s32.totalorder %s607_s16, %s796_s21  ;;  %p801_p10 = scmp.lt.s32.totalorder %s607_s16, %s1048_s7 }
 0x321   : > { %p802_p11 = scmp.lt.s32.totalorder %s800_s30, %s796_s21 }
 0x322   : > { %p798_p7 = pnand %p797_p6, %p947_p4 }
 0x323   : > { %p803_p12 = por %p802_p11, %p801_p10 }
 0x324   : > { %p799_p9 = pneg %p798_p7 }
 0x326   : > { %p804_p13 = pnand %p803_p12, %p799_p9 }
 0x328   : > { %807 = shalt.err (!%p804_p13)
}
 0x329   : > { %719 = dma.vmem_to_hbm [thread:$0]  (%p947_p4), %s610_s10, 128, %s607_s16, %s595_s17  }
 0x32a PF: > { %p725_p0 = scmp.ge.s32.totalorder %s858_s29, 2  ;;  %s621_s15 = sand.u32 1, %s838_s24  }
 0x32b   : > { %s622_s18 = scalar_lea.sflag [#allocation6], %s621_s15 }
 0x32c   : > { %p722_p1 = pnand %p725_p0, %p954_p8 }
 0x32e   : > { %p723_p2 = pneg %p722_p1 }
 0x330   : > { %833 = dma.done.wait (%p723_p2), %s622_s18, 128  }
 0x331   : > { %835 = vsyncadd (%p723_p2), %s622_s18, 4294967168  ;;  %s20_s29 = sadd.s32 1, %s858_s29   ;;  %s1051_s24 = smov %s842_s25 }
 0x332   : > { %p17_p3 = scmp.ge.s32.totalorder %s20_s29, 4   ;;  %s1052_s25 = smov %s846_s26 }
 0x333   : > { %s1053_s26 = smov %s960_s14  ;;  %s1054_s27 = smov %s854_s28 }
 0x334   : > { %s1055_s28 = smov %s1057_s9  ;;  %19 = sbr.rel (!%p17_p3) target bundleno = 4 (0x4), region = 87 }
 0x339   :  { %627 = vsyncpa [#allocation6], 1 }
 0x33a   :  { %629 = vsyncpa [#allocation6 + $0x1], 1 }

</bundles_post_ra>
